<compile_context>
chip_gen: v7x
topology: tpu7x:2x2x1
jax: 0.10.0
libtpu: 0.0.40
codegen_flags: <defaults>
</compile_context>

<pallas_src>
import functools

import jax
import jax.numpy as jnp
from jax.experimental import pallas as pl
from jax.experimental.pallas import tpu as pltpu

BN_EPS = 1e-5


def _round_up(x, m):
    return ((x + m - 1) // m) * m


# --------------------------------------------------------------------------
# Kernel
# --------------------------------------------------------------------------
def proteinnet_kernel(x_ref, w1_ref, b1_ref, wh_ref, bh_ref, out_ref, *, c1, c2):
    """One batch tile: relu(x @ w1' + b1') @ (w2||w3 padded) -> fused log_softmax."""
    w_dtype = w1_ref.dtype

    # linear1 (BN folded into w1'/b1'); MXU operands in weight dtype, f32 acc.
    x = x_ref[...].astype(w_dtype)
    h = jnp.dot(x, w1_ref[...], preferred_element_type=jnp.float32) + b1_ref[...]

    # dropout (eval mode) -> identity ; relu in f32
    h = jnp.maximum(h, 0.0)

    # fused heads: one lane-dense (tile_b, 128) matmul for both linear2/linear3
    z = (
        jnp.dot(h.astype(w_dtype), wh_ref[...], preferred_element_type=jnp.float32)
        + bh_ref[...]
    )

    # lane masks built once at (1, p); broadcasting handles the (tile_b, p) selects
    p = z.shape[-1]
    lanes = jax.lax.broadcasted_iota(jnp.int32, (1, p), 1)
    mask1 = lanes < c1
    mask2 = (lanes >= c1) & (lanes < (c1 + c2))
    mask12 = lanes < (c1 + c2)
    neg_inf = jnp.float32(-jnp.inf)

    # per-head masked maxima (tile_b, 1)
    m1 = jnp.max(jnp.where(mask1, z, neg_inf), axis=-1, keepdims=True)
    m2 = jnp.max(jnp.where(mask2, z, neg_inf), axis=-1, keepdims=True)

    # single EUP exp pass over the fused slab; min(.,0) is a no-op on live lanes
    # and guards the dead/padding lanes against overflow-to-inf.
    m_lane = jnp.where(mask1, m1, m2)                       # (tile_b, p)
    e = jnp.exp(jnp.minimum(z - m_lane, 0.0))

    # masked per-head lane sums and log-sum-exp
    s1 = jnp.sum(jnp.where(mask1, e, 0.0), axis=-1, keepdims=True)
    s2 = jnp.sum(jnp.where(mask2, e, 0.0), axis=-1, keepdims=True)
    sub = jnp.where(mask1, m1 + jnp.log(s1), m2 + jnp.log(s2))   # (tile_b, p)

    # fused output slab; padding lanes (>= c1+c2) are zeroed (don't-care lanes)
    out = jnp.where(mask12, z - sub, 0.0)
    out_ref[...] = out.astype(out_ref.dtype)


# --------------------------------------------------------------------------
# Parameter preparation (offline constant folding)
# --------------------------------------------------------------------------
def fold_params(params, compute_dtype=jnp.bfloat16):
    """Fold BN into linear1, fuse + zero-pad head weights to lane-dense (H, 128)."""
    f_in, hidden = params["w1"].shape
    c1 = params["w2"].shape[1]
    c2 = params["w3"].shape[1]
    p = _round_up(max(c1 + c2, 128), 128)  # lane-dense fused head width

    scale = params["gamma"] * jax.lax.rsqrt(params["var"] + BN_EPS)   # (1, H)
    w1f = params["w1"] * scale                                        # (F_in, H)
    b1f = (params["b1"] - params["mean"]) * scale + params["beta"]    # (1, H)

    wh = jnp.zeros((hidden, p), jnp.float32)
    wh = wh.at[:, :c1].set(params["w2"]).at[:, c1 : c1 + c2].set(params["w3"])
    bh = jnp.zeros((1, p), jnp.float32)
    bh = bh.at[:, :c1].set(params["b2"]).at[:, c1 : c1 + c2].set(params["b3"])

    return dict(
        w1=w1f.astype(compute_dtype),   # MXU operand dtype
        b1=b1f.astype(jnp.float32),     # biases / elementwise stay f32
        wh=wh.astype(compute_dtype),
        bh=bh.astype(jnp.float32),
        c1=c1, c2=c2, p=p,
        f_in=f_in, hidden=hidden,
    )


# --------------------------------------------------------------------------
# Tile / VMEM sizing
# --------------------------------------------------------------------------
def _vmem_budget_bytes():
    """Per-generation VMEM budget: ~75% of physical (v7x 64 MiB -> ~48 MiB,
    v5e/v6e 128 MiB -> ~96 MiB).  Conservative fallback if the query fails."""
    phys = 64 * 1024 * 1024
    try:
        info = pltpu.get_tpu_info()
        phys = int(getattr(info, "vmem_capacity_bytes", phys))
    except Exception:
        pass
    return (phys * 3) // 4


def _footprint_bytes(tile_b, f_in, hidden, p, x_isz, w_isz, out_isz):
    stream = 2 * tile_b * f_in * x_isz + 2 * tile_b * p * out_isz       # double-buffered tiles
    resident = 2 * (f_in * hidden + hidden * p) * w_isz + 2 * (hidden + p) * 4
    live = tile_b * (hidden + 3 * p) * 4                                # f32 intermediates
    return stream + resident + live


def _select_tile_b(B, requested, f_in, hidden, p, x_isz, w_isz, out_isz, budget):
    tile = min(_round_up(requested, 8), _round_up(B, 8))
    # v7x megacore: keep >= 2 grid steps (both TensorCores busy) when B allows
    if B > 16 and pl.cdiv(B, tile) < 2:
        tile = _round_up(pl.cdiv(B, 2), 8)
    # shrink only if the real footprint would not fit the per-generation budget
    while tile > 8 and _footprint_bytes(tile, f_in, hidden, p, x_isz, w_isz, out_isz) > budget:
        tile = _round_up(tile // 2, 8)
    return tile, _footprint_bytes(tile, f_in, hidden, p, x_isz, w_isz, out_isz)


# --------------------------------------------------------------------------
# Wrappers
# --------------------------------------------------------------------------
def proteinnet_forward_fused(x, fused, tile_b=4096, out_dtype=jnp.bfloat16):
    """Production entry point.

    x: (B, infeatures) f32.  fused: output of fold_params.
    Returns the fused (B, p) log-prob slab; lanes [0, c1) are head-1
    (loc) log-probs, lanes [c1, c1+c2) are head-2 (mem) log-probs, remaining
    lanes are zero padding.  Consumers should index with (c1, c2) directly
    (e.g. an NLL gather) instead of slicing the slab in HBM.
    """
    B, f_in = x.shape
    assert f_in == fused["f_in"]
    hidden, p = fused["hidden"], fused["p"]
    c1, c2 = fused["c1"], fused["c2"]

    x_isz = x.dtype.itemsize
    w_isz = jnp.dtype(fused["w1"].dtype).itemsize
    out_isz = jnp.dtype(out_dtype).itemsize

    budget = _vmem_budget_bytes()
    tile_b, footprint = _select_tile_b(
        B, tile_b, f_in, hidden, p, x_isz, w_isz, out_isz, budget
    )
    grid = (pl.cdiv(B, tile_b),)   # no jnp.pad: last partial block is clipped
    vmem_limit = int(min(budget, max(footprint * 5 // 4, 8 * 1024 * 1024)))

    cost = pl.CostEstimate(
        flops=2 * B * (f_in * hidden + hidden * p),
        transcendentals=B * p + 2 * B,            # one exp/lane + two logs/row
        bytes_accessed=(
            B * f_in * x_isz
            + (f_in * hidden + hidden * p) * w_isz
            + (hidden + p) * 4
            + B * p * out_isz
        ),
    )

    kernel = functools.partial(proteinnet_kernel, c1=c1, c2=c2)

    out = pl.pallas_call(
        kernel,
        out_shape=jax.ShapeDtypeStruct((B, p), out_dtype),
        grid_spec=pltpu.PrefetchScalarGridSpec(
            num_scalar_prefetch=0,
            grid=grid,
            in_specs=[
                pl.BlockSpec((tile_b, f_in), lambda i: (i, 0)),   # x: tiled over batch
                pl.BlockSpec((f_in, hidden), lambda i: (0, 0)),   # w1' (BN folded): resident
                pl.BlockSpec((1, hidden), lambda i: (0, 0)),      # b1': resident
                pl.BlockSpec((hidden, p), lambda i: (0, 0)),      # w2||w3 padded: resident
                pl.BlockSpec((1, p), lambda i: (0, 0)),           # b2||b3 padded: resident
            ],
            out_specs=pl.BlockSpec((tile_b, p), lambda i: (i, 0)),
        ),
        compiler_params=pltpu.CompilerParams(
            dimension_semantics=("parallel",),   # v7x: shard batch tiles across 2 TCs
            vmem_limit_bytes=vmem_limit,
        ),
        cost_estimate=cost,
    )(x, fused["w1"], fused["b1"], fused["wh"], fused["bh"])

    return out, c1, c2


def proteinnet_forward(x, fused, tile_b=4096, out_dtype=jnp.bfloat16):
    """Compatibility wrapper matching the PyTorch module API: returns (loc, mem).

    Note: the two slices re-read the slab from HBM; prefer
    proteinnet_forward_fused + direct indexing in the consumer when possible.
    """
    slab, c1, c2 = proteinnet_forward_fused(x, fused, tile_b=tile_b, out_dtype=out_dtype)
    return slab[:, :c1], slab[:, c1 : c1 + c2]


# --------------------------------------------------------------------------
# Synthetic parameters + pure-JAX reference
# --------------------------------------------------------------------------
def init_params(key, infeatures, hidden, classes1, classes2):
    ks = jax.random.split(key, 8)

    def lin(kw, kb, fan_in, fan_out):
        bound = 1.0 / jnp.sqrt(jnp.float32(fan_in))
        w = jax.random.uniform(kw, (fan_in, fan_out), jnp.float32, -bound, bound)
        b = jax.random.uniform(kb, (1, fan_out), jnp.float32, -bound, bound)
        return w, b

    w1, b1 = lin(ks[0], ks[1], infeatures, hidden)
    w2, b2 = lin(ks[2], ks[3], hidden, classes1)
    w3, b3 = lin(ks[4], ks[5], hidden, classes2)

    gamma = 1.0 + 0.1 * jax.random.normal(ks[6], (1, hidden), jnp.float32)
    beta = 0.1 * jax.random.normal(ks[7], (1, hidden), jnp.float32)
    mean = 0.05 * jnp.arange(hidden, dtype=jnp.float32).reshape(1, hidden) / hidden
    var = jnp.ones((1, hidden), jnp.float32) + 0.01 * jnp.arange(
        hidden, dtype=jnp.float32
    ).reshape(1, hidden) / hidden

    return dict(
        w1=w1, b1=b1, w2=w2, b2=b2, w3=w3, b3=b3,
        gamma=gamma, beta=beta, mean=mean, var=var,
    )


def reference_forward(x, p):
    """Pure-JAX eval-mode reference (dropout=identity, BN running stats)."""
    h = x @ p["w1"] + p["b1"]
    h = (h - p["mean"]) * (p["gamma"] / jnp.sqrt(p["var"] + BN_EPS)) + p["beta"]
    h = jnp.maximum(h, 0.0)
    loc = h @ p["w2"] + p["b2"]
    mem = h @ p["w3"] + p["b3"]
    return jax.nn.log_softmax(loc, axis=-1), jax.nn.log_softmax(mem, axis=-1)


# --------------------------------------------------------------------------
if __name__ == "__main__":
    B, INFEATURES, HIDDEN, C1, C2 = 8, 32, 64, 16, 8

    key = jax.random.PRNGKey(0)
    kx, kp = jax.random.split(key)
    x = jax.random.normal(kx, (B, INFEATURES), jnp.float32)
    params = init_params(kp, INFEATURES, HIDDEN, C1, C2)

    loc_ref, mem_ref = reference_forward(x, params)

    # f32 path (f32 MXU, f32 output): tight numerical check against reference.
    fused_f32 = fold_params(params, compute_dtype=jnp.float32)
    loc32, mem32 = proteinnet_forward(x, fused_f32, out_dtype=jnp.float32)
    jax.block_until_ready((loc32, mem32))
    assert loc32.shape == (B, C1) and mem32.shape == (B, C2)
    assert jnp.allclose(loc32, loc_ref, atol=1e-4, rtol=1e-4), "loc mismatch (f32)"
    assert jnp.allclose(mem32, mem_ref, atol=1e-4, rtol=1e-4), "mem mismatch (f32)"

    # bf16 MXU + bf16 output (recommended production config): loose tolerance.
    fused_bf16 = fold_params(params, compute_dtype=jnp.bfloat16)
    loc16, mem16 = proteinnet_forward(x, fused_bf16, out_dtype=jnp.bfloat16)
    jax.block_until_ready((loc16, mem16))
    assert jnp.allclose(loc16.astype(jnp.float32), loc_ref, atol=1e-1, rtol=1e-1), "loc mismatch (bf16)"
    assert jnp.allclose(mem16.astype(jnp.float32), mem_ref, atol=1e-1, rtol=1e-1), "mem mismatch (bf16)"

    # Non-divisible batch: exercises the no-pad partial-block path and a >=2-step grid.
    B2 = 20
    kx2 = jax.random.split(kx)[0]
    x2 = jax.random.normal(kx2, (B2, INFEATURES), jnp.float32)
    loc2_ref, mem2_ref = reference_forward(x2, params)
    loc2, mem2 = proteinnet_forward(x2, fused_f32, tile_b=8, out_dtype=jnp.float32)
    jax.block_until_ready((loc2, mem2))
    assert loc2.shape == (B2, C1) and mem2.shape == (B2, C2)
    assert jnp.allclose(loc2, loc2_ref, atol=1e-4, rtol=1e-4), "loc mismatch (partial block)"
    assert jnp.allclose(mem2, mem2_ref, atol=1e-4, rtol=1e-4), "mem mismatch (partial block)"

    print("KERNEL_OK")
</pallas_src>

<mosaic_0001>
module attributes {stable_mosaic.version = 11 : i64} {
  func.func @proteinnet_kernel(%arg0: i32, %arg1: memref<8x32xf32, #tpu.memory_space<vmem>>, %arg2: memref<32x64xf32, #tpu.memory_space<vmem>>, %arg3: memref<1x64xf32, #tpu.memory_space<vmem>>, %arg4: memref<64x128xf32, #tpu.memory_space<vmem>>, %arg5: memref<1x128xf32, #tpu.memory_space<vmem>>, %arg6: memref<8x128xf32, #tpu.memory_space<vmem>>) attributes {dimension_semantics = [#tpu.dimension_semantics<parallel>], iteration_bounds = array<i64: 1>, scalar_prefetch = 0 : i64, scratch_operands = 0 : i64, tpu.core_type = #tpu.core_type<tc>, window_params = [{transform_indices = @transform_0, window_bounds = array<i64: 8, 32>}, {pipeline_mode = #tpu.pipeline_mode<synchronous>, transform_indices = @transform_1, window_bounds = array<i64: 32, 64>}, {pipeline_mode = #tpu.pipeline_mode<synchronous>, transform_indices = @transform_2, window_bounds = array<i64: 1, 64>}, {pipeline_mode = #tpu.pipeline_mode<synchronous>, transform_indices = @transform_3, window_bounds = array<i64: 64, 128>}, {pipeline_mode = #tpu.pipeline_mode<synchronous>, transform_indices = @transform_4, window_bounds = array<i64: 1, 128>}, {transform_indices = @transform_5, window_bounds = array<i64: 8, 128>}]} {
    %c0 = arith.constant 0 : index
    %c0_0 = arith.constant 0 : index
    %0 = vector.load %arg1[%c0, %c0_0] : memref<8x32xf32, #tpu.memory_space<vmem>>, vector<8x32xf32>
    %c0_1 = arith.constant 0 : index
    %c0_2 = arith.constant 0 : index
    %1 = vector.load %arg2[%c0_1, %c0_2] : memref<32x64xf32, #tpu.memory_space<vmem>>, vector<32x64xf32>
    %cst = arith.constant dense<0.000000e+00> : vector<8x64xf32>
    %2 = tpu.matmul %0, %1, %cst {dimension_numbers = #tpu.dot_dimension_numbers<[1], [0], [0], [1], [0, 0, 1, 1], [], []>} : vector<8x32xf32>, vector<32x64xf32>, vector<8x64xf32> -> vector<8x64xf32>
    %c0_3 = arith.constant 0 : index
    %c0_4 = arith.constant 0 : index
    %3 = vector.load %arg3[%c0_3, %c0_4] : memref<1x64xf32, #tpu.memory_space<vmem>>, vector<1x64xf32>
    %4 = vector.broadcast %3 : vector<1x64xf32> to vector<8x64xf32>
    %5 = arith.addf %2, %4 : vector<8x64xf32>
    %cst_5 = arith.constant 0.000000e+00 : f32
    %6 = vector.broadcast %cst_5 : f32 to vector<8x64xf32>
    %7 = arith.maximumf %5, %6 : vector<8x64xf32>
    %c0_6 = arith.constant 0 : index
    %c0_7 = arith.constant 0 : index
    %8 = vector.load %arg4[%c0_6, %c0_7] : memref<64x128xf32, #tpu.memory_space<vmem>>, vector<64x128xf32>
    %cst_8 = arith.constant dense<0.000000e+00> : vector<8x128xf32>
    %9 = tpu.matmul %7, %8, %cst_8 {dimension_numbers = #tpu.dot_dimension_numbers<[1], [0], [0], [1], [0, 0, 1, 1], [], []>} : vector<8x64xf32>, vector<64x128xf32>, vector<8x128xf32> -> vector<8x128xf32>
    %c0_9 = arith.constant 0 : index
    %c0_10 = arith.constant 0 : index
    %10 = vector.load %arg5[%c0_9, %c0_10] : memref<1x128xf32, #tpu.memory_space<vmem>>, vector<1x128xf32>
    %11 = vector.broadcast %10 : vector<1x128xf32> to vector<8x128xf32>
    %12 = arith.addf %9, %11 : vector<8x128xf32>
    %13 = tpu.iota {dimensions = array<i32: 1>} : vector<1x128xi32>
    %c16_i32 = arith.constant 16 : i32
    %14 = vector.broadcast %c16_i32 : i32 to vector<1x128xi32>
    %15 = arith.cmpi slt, %13, %14 : vector<1x128xi32>
    %c16_i32_11 = arith.constant 16 : i32
    %16 = vector.broadcast %c16_i32_11 : i32 to vector<1x128xi32>
    %17 = arith.cmpi sge, %13, %16 : vector<1x128xi32>
    %c24_i32 = arith.constant 24 : i32
    %18 = vector.broadcast %c24_i32 : i32 to vector<1x128xi32>
    %19 = arith.cmpi slt, %13, %18 : vector<1x128xi32>
    %20 = arith.andi %17, %19 : vector<1x128xi1>
    %c24_i32_12 = arith.constant 24 : i32
    %21 = vector.broadcast %c24_i32_12 : i32 to vector<1x128xi32>
    %22 = arith.cmpi slt, %13, %21 : vector<1x128xi32>
    %cst_13 = arith.constant 0xFF800000 : f32
    %23 = vector.shape_cast %15 : vector<1x128xi1> to vector<1x128xi1>
    %24 = vector.broadcast %23 : vector<1x128xi1> to vector<8x128xi1>
    %25 = vector.broadcast %cst_13 : f32 to vector<8x128xf32>
    %26 = arith.select %24, %12, %25 : vector<8x128xi1>, vector<8x128xf32>
    %cst_14 = arith.constant dense<0xFF800000> : vector<8xf32>
    %27 = vector.multi_reduction <maximumf>, %26, %cst_14 [1] : vector<8x128xf32> to vector<8xf32>
    %28 = vector.shape_cast %27 : vector<8xf32> to vector<8x1xf32>
    %cst_15 = arith.constant 0xFF800000 : f32
    %29 = vector.shape_cast %20 : vector<1x128xi1> to vector<1x128xi1>
    %30 = vector.broadcast %29 : vector<1x128xi1> to vector<8x128xi1>
    %31 = vector.broadcast %cst_15 : f32 to vector<8x128xf32>
    %32 = arith.select %30, %12, %31 : vector<8x128xi1>, vector<8x128xf32>
    %cst_16 = arith.constant dense<0xFF800000> : vector<8xf32>
    %33 = vector.multi_reduction <maximumf>, %32, %cst_16 [1] : vector<8x128xf32> to vector<8xf32>
    %34 = vector.shape_cast %33 : vector<8xf32> to vector<8x1xf32>
    %35 = vector.shape_cast %15 : vector<1x128xi1> to vector<1x128xi1>
    %36 = vector.broadcast %35 : vector<1x128xi1> to vector<8x128xi1>
    %37 = vector.shape_cast %28 : vector<8x1xf32> to vector<8x1xf32>
    %38 = vector.broadcast %37 : vector<8x1xf32> to vector<8x128xf32>
    %39 = vector.shape_cast %34 : vector<8x1xf32> to vector<8x1xf32>
    %40 = vector.broadcast %39 : vector<8x1xf32> to vector<8x128xf32>
    %41 = arith.select %36, %38, %40 : vector<8x128xi1>, vector<8x128xf32>
    %42 = arith.subf %12, %41 : vector<8x128xf32>
    %cst_17 = arith.constant 0.000000e+00 : f32
    %43 = vector.broadcast %cst_17 : f32 to vector<8x128xf32>
    %44 = arith.minimumf %42, %43 : vector<8x128xf32>
    %45 = math.exp %44 : vector<8x128xf32>
    %cst_18 = arith.constant 0.000000e+00 : f32
    %46 = vector.shape_cast %15 : vector<1x128xi1> to vector<1x128xi1>
    %47 = vector.broadcast %46 : vector<1x128xi1> to vector<8x128xi1>
    %48 = vector.broadcast %cst_18 : f32 to vector<8x128xf32>
    %49 = arith.select %47, %45, %48 : vector<8x128xi1>, vector<8x128xf32>
    %cst_19 = arith.constant dense<0.000000e+00> : vector<8xf32>
    %50 = vector.multi_reduction <add>, %49, %cst_19 [1] : vector<8x128xf32> to vector<8xf32>
    %51 = vector.shape_cast %50 : vector<8xf32> to vector<8x1xf32>
    %cst_20 = arith.constant 0.000000e+00 : f32
    %52 = vector.shape_cast %20 : vector<1x128xi1> to vector<1x128xi1>
    %53 = vector.broadcast %52 : vector<1x128xi1> to vector<8x128xi1>
    %54 = vector.broadcast %cst_20 : f32 to vector<8x128xf32>
    %55 = arith.select %53, %45, %54 : vector<8x128xi1>, vector<8x128xf32>
    %cst_21 = arith.constant dense<0.000000e+00> : vector<8xf32>
    %56 = vector.multi_reduction <add>, %55, %cst_21 [1] : vector<8x128xf32> to vector<8xf32>
    %57 = vector.shape_cast %56 : vector<8xf32> to vector<8x1xf32>
    %58 = math.log %51 : vector<8x1xf32>
    %59 = arith.addf %28, %58 : vector<8x1xf32>
    %60 = math.log %57 : vector<8x1xf32>
    %61 = arith.addf %34, %60 : vector<8x1xf32>
    %62 = vector.shape_cast %15 : vector<1x128xi1> to vector<1x128xi1>
    %63 = vector.broadcast %62 : vector<1x128xi1> to vector<8x128xi1>
    %64 = vector.shape_cast %59 : vector<8x1xf32> to vector<8x1xf32>
    %65 = vector.broadcast %64 : vector<8x1xf32> to vector<8x128xf32>
    %66 = vector.shape_cast %61 : vector<8x1xf32> to vector<8x1xf32>
    %67 = vector.broadcast %66 : vector<8x1xf32> to vector<8x128xf32>
    %68 = arith.select %63, %65, %67 : vector<8x128xi1>, vector<8x128xf32>
    %69 = arith.subf %12, %68 : vector<8x128xf32>
    %cst_22 = arith.constant 0.000000e+00 : f32
    %70 = vector.shape_cast %22 : vector<1x128xi1> to vector<1x128xi1>
    %71 = vector.broadcast %70 : vector<1x128xi1> to vector<8x128xi1>
    %72 = vector.broadcast %cst_22 : f32 to vector<8x128xf32>
    %73 = arith.select %71, %69, %72 : vector<8x128xi1>, vector<8x128xf32>
    %c0_23 = arith.constant 0 : index
    %c0_24 = arith.constant 0 : index
    %74 = vector.load %arg6[%c0_23, %c0_24] : memref<8x128xf32, #tpu.memory_space<vmem>>, vector<8x128xf32>
    tpu.vector_store %arg6[%c0_23, %c0_24], %73 {strides = array<i32>} : memref<8x128xf32, #tpu.memory_space<vmem>>, vector<8x128xf32>,
    return
  }
  func.func @transform_0(%arg0: i32) -> (i32, i32) {
    %c0_i32 = arith.constant 0 : i32
    %c0_i32_0 = arith.constant 0 : i32
    return %arg0, %c0_i32 : i32, i32
  }
  func.func @transform_1(%arg0: i32) -> (i32, i32) {
    %c0_i32 = arith.constant 0 : i32
    %c0_i32_0 = arith.constant 0 : i32
    %c0_i32_1 = arith.constant 0 : i32
    return %c0_i32, %c0_i32_0 : i32, i32
  }
  func.func @transform_2(%arg0: i32) -> (i32, i32) {
    %c0_i32 = arith.constant 0 : i32
    %c0_i32_0 = arith.constant 0 : i32
    %c0_i32_1 = arith.constant 0 : i32
    return %c0_i32, %c0_i32_0 : i32, i32
  }
  func.func @transform_3(%arg0: i32) -> (i32, i32) {
    %c0_i32 = arith.constant 0 : i32
    %c0_i32_0 = arith.constant 0 : i32
    %c0_i32_1 = arith.constant 0 : i32
    return %c0_i32, %c0_i32_0 : i32, i32
  }
  func.func @transform_4(%arg0: i32) -> (i32, i32) {
    %c0_i32 = arith.constant 0 : i32
    %c0_i32_0 = arith.constant 0 : i32
    %c0_i32_1 = arith.constant 0 : i32
    return %c0_i32, %c0_i32_0 : i32, i32
  }
  func.func @transform_5(%arg0: i32) -> (i32, i32) {
    %c0_i32 = arith.constant 0 : i32
    %c0_i32_0 = arith.constant 0 : i32
    return %arg0, %c0_i32 : i32, i32
  }
}

</mosaic_0001>

<bundles_post_ra>
// kernel: tpu_custom_call.1
= control target key start
LH: loop header
LB: loop body
LE: loop exit
PB: predicated region body
PF: predicated region fallthrough
CT: control target
= control target key end

     0   :  { %10 = vsyncpa [#allocation3], 0  ;;  %s571_s0 = inlined_call_operand.hbm [shape: f32[8,32], index: 0, kind: input, shape index: {}]   ;;  %s572_s1 = inlined_call_operand.hbm [shape: f32[32,64], index: 1, kind: input, shape index: {}]   ;;  %s573_s2 = inlined_call_operand.vmem [shape: f32[1,64], index: 2, kind: input, shape index: {}]   ;;  %s574_s3 = inlined_call_operand.hbm [shape: f32[64,128], index: 3, kind: input, shape index: {}]   ;;  %s575_s4 = inlined_call_operand.vmem [shape: f32[1,128], index: 4, kind: input, shape index: {}]   ;;  %s576_s5 = inlined_call_operand.hbm [shape: f32[8,128], index: 5, kind: output, shape index: {}]  }
   0x1   :  { %11 = vsyncpa [#allocation6], 0 }
   0x2   :  { %12 = vsyncpa [#allocation4], 0  ;;  %s466_s18 = smov [#allocation5]   ;;  %s372_s22 = scalar_lea.hbm %s572_s1, 512 }
   0x3   :  { %s28_s19 = sshll.u32 %s466_s18, 4  ;;  %p373_p0 = scmp.ne.s32.totalorder %s572_s1, %s372_s22  ;;  %s29_s19 = int_to_ptr.vmem [resolvable:$true] %s28_s19 }
   0x4   :  { %p376_p1 = scmp.lt.u32.totalorder %s372_s22, %s572_s1 }
   0x6   :  { %p378_p2 = pnand %p376_p1, %p373_p0 }
   0x8   :  { %381 = shalt.err (!%p378_p2)
}
   0x9   :  { %s382_s27 = scalar_lea.vmem %s29_s19, 512  ;;  %p387_p4 = scmp.lt.s32.totalorder %s29_s19, %s29_s19 }
   0xa   :  { %p383_p3 = scmp.ne.s32.totalorder %s29_s19, %s382_s27  ;;  %p388_p5 = scmp.lt.s32.totalorder %s382_s27, %s382_s27 }
   0xc   :  { %p389_p6 = por %p388_p5, %p387_p4 }
   0xe   :  { %p390_p7 = pnand %p389_p6, %p383_p3 }
  0x10   :  { %393 = shalt.err (!%p390_p7)
}
  0x11   :  { %s467_s28 = smov 128   ;;  %s468_s29 = smov 8  }
  0x12   :  { %34 = dma.hbm_to_vmem [thread:$0]  %s572_s1, 512, %s29_s19, [#allocation6], %s467_s28, %s467_s28, %s468_s29  }
  0x13   :  { %s469_s7 = smov [#allocation2]   ;;  %s470_s9 = smov [#allocation7]  }
  0x14   :  { %s19_s8 = sshll.u32 %s469_s7, 4  ;;  %s42_s10 = sshll.u32 %s470_s9, 4  ;;  %s20_s8 = int_to_ptr.vmem [resolvable:$true] %s19_s8  ;;  %s43_s10 = int_to_ptr.vmem [resolvable:$true] %s42_s10 }
  0x15   :  { %s394_s13 = scalar_lea.hbm %s571_s0, 128 }
  0x16   :  { %p395_p8 = scmp.ne.s32.totalorder %s571_s0, %s394_s13  ;;  %p398_p9 = scmp.lt.u32.totalorder %s394_s13, %s571_s0 }
  0x18   :  { %p400_p10 = pnand %p398_p9, %p395_p8 }
  0x1a   :  { %403 = shalt.err (!%p400_p10)
}
  0x1b   :  { %s404_s1 = scalar_lea.vmem %s20_s8, 128  ;;  %p409_p12 = scmp.lt.s32.totalorder %s20_s8, %s20_s8 }
  0x1c   :  { %p405_p11 = scmp.ne.s32.totalorder %s20_s8, %s404_s1  ;;  %p410_p13 = scmp.lt.s32.totalorder %s404_s1, %s404_s1 }
  0x1e   :  { %p411_p0 = por %p410_p13, %p409_p12 }
  0x20   :  { %p412_p1 = pnand %p411_p0, %p405_p11 }
  0x22   :  { %415 = shalt.err (!%p412_p1)
}
  0x23   :  { %22 = dma.hbm_to_vmem [thread:$0]  %s571_s0, 128, %s20_s8, [#allocation3]  }
  0x24   :  { %s416_s22 = scalar_lea.hbm %s574_s3, 1024 }
  0x25   :  { %p417_p2 = scmp.ne.s32.totalorder %s574_s3, %s416_s22  ;;  %p420_p3 = scmp.lt.u32.totalorder %s416_s22, %s574_s3 }
  0x27   :  { %p422_p4 = pnand %p420_p3, %p417_p2 }
  0x29   :  { %425 = shalt.err (!%p422_p4)
}
  0x2a   :  { %s426_s27 = scalar_lea.vmem %s43_s10, 1024  ;;  %p431_p6 = scmp.lt.s32.totalorder %s43_s10, %s43_s10 }
  0x2b   :  { %p427_p5 = scmp.ne.s32.totalorder %s43_s10, %s426_s27  ;;  %p432_p7 = scmp.lt.s32.totalorder %s426_s27, %s426_s27 }
  0x2d   :  { %p433_p8 = por %p432_p7, %p431_p6 }
  0x2f   :  { %p434_p9 = pnand %p433_p8, %p427_p5 }
  0x31   :  { %437 = shalt.err (!%p434_p9)
}
  0x32   :  { %48 = dma.hbm_to_vmem [thread:$0]  %s574_s3, 1024, %s43_s10, [#allocation6], %s467_s28, %s467_s28, %s468_s29  }
  0x33   :  { %460 = dma.done.wait [#allocation3], 128  }
  0x34   :  { %461 = vsyncadd [#allocation3], 4294967168 }
  0x35   :  { %462 = dma.done.wait [#allocation6], 1536  }
  0x36   :  { %463 = vsyncadd [#allocation6], 4294965760  ;;  %v471_v0 = vmov 0.0|0.0   ;;  %vm472_vm0 = vmmov 0   ;;  %v473_v1 = vmov 0.0   ;;  %v61_v2 = vld [vmem:[#allocation5] sm:$0xff]  ;;  %v236_v26 = vlaneseq }
  0x37   :  { %339 = vmatprep.subr.bf16.mxu0 %v471_v0  ;;  %317 = vmatprep.mubr.msk.f32.mxu0 %vm472_vm0, %v473_v1  ;;  %v62_v3 = vld [vmem:[#allocation5 + $0x8] sm:$0xff]  ;;  %v63_v4 = vld [vmem:[#allocation5 + $0x10] sm:$0xff]  ;;  %v64_v6 = vld [vmem:[#allocation5 + $0x18] sm:$0xff]  ;;  %vm72_vm1 = vcmask 261120   ;;  %vm162_vm2 = vcmask 523264  }
  0x38   :  { %345 = vmatprep.subr.bf16.mxu1 %v471_v0  ;;  %336 = vmatprep.mubr.msk.f32.mxu1 %vm472_vm0, %v473_v1  ;;  %v340_v5 = vpack.c.bf16 %v62_v3, %v61_v2  ;;  %v147_v7 = vld [vmem:[#allocation7] sm:$0xff]  ;;  %v148_v8 = vld [vmem:[#allocation7 + $0x8] sm:$0xff]  ;;  %v149_v9 = vld [vmem:[#allocation7 + $0x10] sm:$0xff]  ;;  %v343_v11 = vpack.c.bf16 %v64_v6, %v63_v4  ;;  %v237_v27 = vand.u32 127, %v236_v26 }
  0x39   :  { %v150_v10 = vld [vmem:[#allocation7 + $0x18] sm:$0xff]  ;;  %v346_v12 = vpack.c.bf16 %v148_v8, %v147_v7  ;;  %v151_v14 = vld [vmem:[#allocation7 + $0x20] sm:$0xff]  ;;  %v152_v15 = vld [vmem:[#allocation7 + $0x28] sm:$0xff] }
  0x3a   :  { %341 = vmatpush3.bf16.msra.mxu0 %v340_v5  ;;  %v349_v13 = vpack.c.bf16 %v150_v10, %v149_v9  ;;  %v60_v16 = vld [vmem:[#allocation2] sm:$0xff]  ;;  %v352_v17 = vpack.c.bf16 %v152_v15, %v151_v14  ;;  %v153_v18 = vld [vmem:[#allocation7 + $0x30] sm:$0xff]  ;;  %vm238_vm3 = vcmp.lt.s32.totalorder %v237_v27, 16  ;;  %vm239_vm4 = vcmp.ge.s32.totalorder %v237_v27, 16 }
  0x3b   :  { %342 = vmatprep.subr.bf16.mxu0 %v471_v0  ;;  %347 = vmatpush3.bf16.msra.mxu1 %v346_v12  ;;  %v154_v19 = vld [vmem:[#allocation7 + $0x38] sm:$0xff]  ;;  %vm240_vm5 = vcmp.lt.s32.totalorder %v237_v27, 24 }
  0x3c   :  { %348 = vmatprep.subr.bf16.mxu1 %v471_v0  ;;  %v355_v20 = vpack.c.bf16 %v154_v19, %v153_v18  ;;  %v291_v21 = vld [vmem:[%s573_s2] ss:$0 sm:$0xff]  ;;  %vm241_vm6 = vmand %vm239_vm4, %vm240_vm5  ;;  %s474_s2 = smov [#allocation8]  }
  0x3d   :  { %v293_v28 = vld [vmem:[%s575_s4] ss:$0 sm:$0xff]  ;;  %s281_s4 = sshll.u32 %s474_s2, 4  ;;  %s282_s4 = int_to_ptr.vmem [resolvable:$true] %s281_s4 }
  0x3e   :  { %344 = vmatpush3.bf16.msra.mxu0 %v343_v11  ;;  %s438_s7 = scalar_lea.vmem %s282_s4, 128  ;;  %p443_p11 = scmp.lt.s32.totalorder %s282_s4, %s282_s4 }
  0x3f   :  { %350 = vmatpush3.bf16.msra.mxu1 %v349_v13  ;;  %p439_p10 = scmp.ne.s32.totalorder %s282_s4, %s438_s7  ;;  %p444_p12 = scmp.lt.s32.totalorder %s438_s7, %s438_s7 }
  0x40   :  { %351 = vmatprep.subr.bf16.mxu1 %v471_v0 }
  0x41   :  { %318 = vmatmul.mubr.msk.f32.vlgmr.msra.gmra.mrb[0].mxu0 %vm72_vm1, %v60_v16  ;;  %p445_p13 = por %p444_p12, %p443_p11 }
  0x43   :  { %353 = vmatpush3.bf16.msra.mxu1 %v352_v17  ;;  %p446_p0 = pnand %p445_p13, %p439_p10 }
  0x44   :  { %354 = vmatprep.subr.bf16.mxu1 %v471_v0 }
  0x47   :  { %356 = vmatpush3.bf16.msra.mxu1 %v355_v20 }
 0x114   :  { %v142_v22 = vpop.f32.mrb[0].mxu0 }
 0x115   :  { %v143_v23 = vadd.f32 %v291_v21, %v142_v22  ;;  %v319_v24 = vpop.f32.mrb[1].mxu0 }
 0x117   :  { %v146_v25 = vmax.f32 %v143_v23, 0.0 }
 0x119   :  { %337 = vmatmul.mubr.msk.f32.vlgmr.msra.gmra.mrb[0].mxu1 %vm162_vm2, %v146_v25 }
 0x1ec   :  { %v232_v29 = vpop.f32.mrb[0].mxu1 }
 0x1ed   :  { %v233_v30 = vadd.f32 %v293_v28, %v232_v29  ;;  %v338_v31 = vpop.f32.mrb[1].mxu1 }
 0x1ef   :  { %v244_v32 = vsel %vm238_vm3, %v233_v30, -inf  ;;  %v249_v33 = vsel %vm241_vm6, %v233_v30, -inf }
 0x1f0   :  { %245 = vmax.xlane.f32.xlu0 %v244_v32 }
 0x1f4   :  { %250 = vmax.xlane.f32.xlu0 %v249_v33 }
 0x27d   :  { %v246_v34 = vpop.xlane.xlu0 %245 }
 0x281   :  { %v251_v35 = vpop.xlane.xlu0 %250 }
 0x282   :  { %v252_v36 = vsel %vm238_vm3, %v246_v34, %v251_v35 }
 0x283   :  { %v253_v37 = vsub.f32 %v233_v30, %v252_v36 }
 0x285   :  { %v254_v38 = vmin.f32 %v253_v37, 0.0 }
 0x287   :  { %v255_v39 = vmul.f32 1.442695, %v254_v38 }
 0x289   :  { %366 = vpow2.f32 %v255_v39 }
 0x293   :  { %v367_v40 = vpop.eup %366 }
 0x294   :  { %v257_v41 = vsel %vm238_vm3, %v367_v40, 0.0  ;;  %v260_v42 = vsel %vm241_vm6, %v367_v40, 0.0 }
 0x295   :  { %258 = vadd.xlane.f32.xlu1 %v257_v41 }
 0x299   :  { %261 = vadd.xlane.f32.xlu1 %v260_v42 }
 0x322   :  { %v259_v43 = vpop.xlane.xlu1 %258 }
 0x323   :  { %368 = vlog2.f32 %v259_v43 }
 0x326   :  { %v262_v44 = vpop.xlane.xlu1 %261 }
 0x327   :  { %370 = vlog2.f32 %v262_v44 }
 0x32d   :  { %v369_v45 = vpop.eup %368 }
 0x32e   :  { %v264_v46 = vmul.f32 0.6931472, %v369_v45 }
 0x330   :  { %v265_v49 = vadd.f32 %v264_v46, %v246_v34 }
 0x331   :  { %v371_v47 = vpop.eup %370 }
 0x332   :  { %v267_v48 = vmul.f32 0.6931472, %v371_v47 }
 0x334   :  { %v268_v50 = vadd.f32 %v267_v48, %v251_v35 }
 0x336   :  { %v269_v51 = vsel %vm238_vm3, %v265_v49, %v268_v50 }
 0x337   :  { %v270_v52 = vsub.f32 %v233_v30, %v269_v51 }
 0x339   :  { %v273_v53 = vsel %vm240_vm5, %v270_v52, 0.0 }
 0x33a   :  { %274 = vst [vmem:[#allocation8] sm:$0xff] %v273_v53 }
 0x33b   :  { %449 = shalt.err (!%p446_p0)
}
 0x33c   :  { %s450_s10 = scalar_lea.hbm %s576_s5, 128 }
 0x33d   :  { %p451_p1 = scmp.ne.s32.totalorder %s576_s5, %s450_s10  ;;  %p454_p2 = scmp.lt.u32.totalorder %s450_s10, %s576_s5 }
 0x33f   :  { %p456_p3 = pnand %p454_p2, %p451_p1 }
 0x341   :  { %459 = shalt.err (!%p456_p3)
}
 0x342   :  { %284 = dma.vmem_to_hbm [thread:$0]  %s282_s4, 128, %s576_s5, [#allocation4]  }
 0x343   :  { %464 = dma.done.wait [#allocation4], 128  }
 0x344   :  { %465 = vsyncadd [#allocation4], 4294967168 }
 0x345   :  { %288 = vsyncpa [#allocation3], 1 }
 0x346   :  { %289 = vsyncpa [#allocation6], 1 }
 0x347   :  { %290 = vsyncpa [#allocation4], 1 }

</bundles_post_ra>
